<compile_context>
chip_gen: v6e
topology: v6e:2x2x1
jax: 0.10.0
libtpu: 0.0.40
codegen_flags: <defaults>
</compile_context>

<pallas_src>
import jax
import jax.numpy as jnp
from jax import lax
from jax.experimental import pallas as pl
from jax.experimental.pallas import tpu as pltpu

F_PAD = 128        # times row / frame-set lane width (one vreg lane width)
TIME_PAD = 1e9     # sentinel for unused lanes of the times row (>> any frame id)


# ----------------------------- Pallas kernel -------------------------------
def make_sampler_kernel(scale, offset, batch_size):
    """Fused normalize + dedup/rank + frame-set kernel (scale/offset immediates)."""
    sx, sy, st = (float(v) for v in scale)
    ox, oy, ot = (float(v) for v in offset)
    b = int(batch_size)
    n = 2 * b                          # rows [0,b)=t1, [b,2b)=t2; n % 8 == 0

    def kernel(pts_ref, times_ref, out_ref):
        pts = pts_ref[...]             # (n, 3) f32
        times = times_ref[...]         # (1, F_PAD) f32, pad = TIME_PAD

        x, y, t = pts[:, 0:1], pts[:, 1:2], pts[:, 2:3]
        xn = x * sx + ox
        yn = y * sy + oy
        tn = t * st + ot

        lane = lax.broadcasted_iota(jnp.int32, (n, F_PAD), 1)
        sub = lax.broadcasted_iota(jnp.int32, (n, F_PAD), 0)

        # Pairwise compares between the point times (sublanes) and the times
        # row (lanes). Lanes k < n hold exactly t_k, so eq restricted to those
        # lanes is the point-vs-point matrix as well.
        eq = t == times                # (n, F_PAD): t_i == times_k
        lt = times < t                 # (n, F_PAD): times_k <  t_i

        # first occurrence of each value along the lane axis (dedup mask)
        dup_before_lane = jnp.sum(jnp.where(eq & (sub < lane), 1, 0),
                                  axis=0, keepdims=True)          # (1, F_PAD)
        first_lane = dup_before_lane == 0
        # first occurrence of each value along the point (sublane) axis
        dup_before_pt = jnp.sum(jnp.where(eq & (lane < sub), 1, 0),
                                axis=1, keepdims=True)            # (n, 1)
        first_pt = dup_before_pt == 0

        # rank of t_i in the sorted unique frame set = #distinct values < t_i
        idx_i = jnp.sum(jnp.where(first_lane & lt, 1, 0),
                        axis=1, keepdims=True)                    # (n, 1) i32
        idx_f = idx_i.astype(jnp.float32)

        # sorted-unique frame set: scatter each first-occurrence value to the
        # lane equal to its rank; un-hit lanes -> -1 padding.
        match = first_pt & (idx_i == lane)                        # (n, F_PAD)
        frames_vals = jnp.sum(jnp.where(match, t, 0.0), axis=0, keepdims=True)
        got = jnp.sum(jnp.where(match, 1, 0), axis=0, keepdims=True) > 0
        frames_row = jnp.where(got, frames_vals, -1.0)            # (1, F_PAD)

        # per-point output lanes (single pass over the merged t1/t2 rows)
        def put(col, v):
            return jnp.where(lane == col, v, 0.0)

        slab = (put(0, xn) + put(1, yn)
                + jnp.where((lane == 2) | (lane == 6), tn, 0.0)
                + put(3, idx_f) + put(4, x) + put(5, y) + put(7, t))

        out_ref[0:n, :] = slab                                    # aligned vst
        sub8 = lax.broadcasted_iota(jnp.int32, (8, F_PAD), 0)
        out_ref[n:n + 8, :] = jnp.where(sub8 == 0, frames_row, 0.0)

    return kernel


def pallas_normalize_and_match(kernel, pts, times_row):
    n = pts.shape[0]
    # Single block, no grid: whole arrays live in VMEM. 2 input DMAs + 1
    # lane-dense output DMA; footprint ~13 KiB so no tiling question anywhere.
    vmem = pl.BlockSpec(memory_space=pltpu.MemorySpace.VMEM)
    return pl.pallas_call(
        kernel,
        out_shape=jax.ShapeDtypeStruct((n + 8, F_PAD), jnp.float32),
        in_specs=[vmem, vmem],
        out_specs=vmem,
    )(pts, times_row)


# ------------------------------ glue (JAX) ---------------------------------
class RangeNormalizer:
    """normalized = x / (shape - 1) * (dst[1] - dst[0]) + dst[0], per column (x, y, t)."""

    def __init__(self, shapes):
        self.shapes = tuple(float(s) for s in shapes)     # (W, H, T)

    def scale_offset(self, dst):
        d0, d1 = float(dst[0]), float(dst[1])
        scale = tuple((d1 - d0) / (s - 1.0) for s in self.shapes)
        offset = (d0, d0, d0)
        return scale, offset


class DinoTrackerSampler:
    def __init__(self, batch_size, range_normalizer, dst_range,
                 fg_trajectories=None, bg_trajectories=None,
                 fg_traj_ratio=0.5, num_frames=None, seed=0):
        assert num_frames is not None, "num_frames must be specified"
        assert 2 * batch_size <= F_PAD, "frame-set padding too small for batch_size"
        assert (2 * batch_size) % 8 == 0, \
            "batch_size must be a multiple of 4 (keeps output stores (8,128)-aligned)"
        self.batch_size = batch_size
        self.num_frames = num_frames
        self.fg_traj_ratio = fg_traj_ratio
        self.range_normalizer = range_normalizer
        self.dst_range = dst_range
        self._key = jax.random.PRNGKey(seed)

        self.fg_valid_trajectories, self.fg_can_sample = \
            self._get_valid_trajectories(fg_trajectories)
        self.bg_valid_trajectories, self.bg_can_sample = \
            self._get_valid_trajectories(bg_trajectories)
        self.vid_len = self.fg_valid_trajectories.shape[1]

        fg_bs = int(batch_size * fg_traj_ratio)
        bg_bs = batch_size - fg_bs
        scale, offset = range_normalizer.scale_offset(dst_range)
        kernel = make_sampler_kernel(scale, offset, batch_size)
        b = batch_size
        nf = num_frames

        # ---- everything below is fixed-shape and lives inside ONE jax.jit ----
        def select_frames(key, can_sample):
            t_dim = can_sample.shape[1]

            def body(state):
                key, _, _ = state
                key, k = jax.random.split(key)
                frame_indices = jax.random.permutation(k, t_dim)[:nf]
                n_ok = jnp.sum(can_sample[:, frame_indices].sum(axis=1) >= 2)
                return key, frame_indices, n_ok

            def cond(state):
                return state[2] < 2

            init = (key, jnp.zeros((nf,), jnp.int32), jnp.zeros((), jnp.int32))
            key, frame_indices, _ = lax.while_loop(cond, body, init)
            return key, frame_indices

        def sample_pair(key, trajs, can_sample, bs):
            t_dim = can_sample.shape[1]
            key, frame_indices = select_frames(key, can_sample)
            can_at = can_sample[:, frame_indices].sum(axis=1) >= 2
            key, k_rows, k_times = jax.random.split(key, 3)
            # randperm over valid rows, take bs  == Gumbel top-bs over valid rows
            row_scores = jnp.where(can_at, jax.random.gumbel(k_rows, can_at.shape),
                                   -jnp.inf)
            _, sel = lax.top_k(row_scores, bs)
            # TODO(synk): if fewer than bs rows are valid, torch returns a smaller
            # (dynamic-shape) batch; here the batch stays fixed-size.
            in_frames = jnp.zeros((t_dim,), bool).at[frame_indices].set(True)
            allowed = can_sample[sel] & in_frames[None, :]
            # multinomial(2, replacement=False) over 0/1 weights == Gumbel top-2
            t_scores = jnp.where(allowed, jax.random.gumbel(k_times, allowed.shape),
                                 -jnp.inf)
            _, top2 = lax.top_k(t_scores, 2)
            t1, t2 = top2[:, 0], top2[:, 1]
            t1_points = jnp.concatenate(
                [trajs[sel, t1], t1[:, None].astype(jnp.float32)], axis=-1)
            t2_points = jnp.concatenate(
                [trajs[sel, t2], t2[:, None].astype(jnp.float32)], axis=-1)
            return key, t1_points, t2_points

        def fwd(key, fg_trajs, fg_can, bg_trajs, bg_can):
            key, fg_t1, fg_t2 = sample_pair(key, fg_trajs, fg_can, fg_bs)
            key, bg_t1, bg_t2 = sample_pair(key, bg_trajs, bg_can, bg_bs)
            t1_points = jnp.concatenate([fg_t1, bg_t1], axis=0)      # (B, 3)
            t2_points = jnp.concatenate([fg_t2, bg_t2], axis=0)      # (B, 3)
            pts = jnp.concatenate([t1_points, t2_points], axis=0)    # (2B, 3)

            # raw times laid out on lanes; pad with a huge sentinel (never a
            # real frame id, never < a real frame id).
            times_row = jnp.pad(pts[:, 2][None, :],
                                ((0, 0), (0, F_PAD - 2 * b)),
                                constant_values=TIME_PAD).astype(jnp.float32)

            slab = pallas_normalize_and_match(kernel, pts, times_row)

            frames_sorted = slab[2 * b, :2 * b]                      # -1 padded
            n_unique = jnp.sum((frames_sorted >= 0.0).astype(jnp.int32))

            sample = {
                'source_frame_indices': slab[:b, 3].astype(jnp.int32),
                'target_frame_indices': slab[b:2 * b, 3].astype(jnp.int32),
                't1_points_normalized': slab[:b, 0:3],
                't2_points_normalized': slab[b:2 * b, 0:3],
                't1_points': slab[:b, 4:7],        # raw x, raw y, normalized t
                'target_times': slab[b:2 * b, 7],  # raw t2 times
            }
            return sample, frames_sorted.astype(jnp.int32), n_unique

        self._forward_jit = jax.jit(fwd)

    @staticmethod
    def _get_valid_trajectories(trajectories):
        # TODO(synk): dynamic-shape boolean filtering (init-time only) stays in
        # eager JAX — no fixed-shape Pallas equivalent.
        can_sample = jnp.logical_not(jnp.isnan(trajectories).any(axis=-1))
        valid_idx = can_sample.sum(axis=1) > 1
        return trajectories[valid_idx], can_sample[valid_idx]

    def forward(self):
        assert self.num_frames is not None, "num_frames must be specified"
        self._key, k = jax.random.split(self._key)
        sample, frames_all, n_unique = self._forward_jit(
            k, self.fg_valid_trajectories, self.fg_can_sample,
            self.bg_valid_trajectories, self.bg_can_sample)
        sample = dict(sample)
        # TODO(synk): torch.unique has a dynamic output size; trim the padded,
        # sorted result on host (the single device->host sync per forward()).
        sample['frames_set_t'] = frames_all[: int(n_unique)]
        return sample


# --------------------------------- main ------------------------------------
if __name__ == "__main__":
    key = jax.random.PRNGKey(0)
    W, H, T = 32, 24, 16
    N_FG, N_BG = 64, 64
    batch_size = 8
    num_frames = 8

    k1, k2, k3, k4 = jax.random.split(key, 4)
    fg_xy = jax.random.uniform(k1, (N_FG, T, 2)) * jnp.array([W - 1, H - 1], jnp.float32)
    bg_xy = jax.random.uniform(k2, (N_BG, T, 2)) * jnp.array([W - 1, H - 1], jnp.float32)
    fg_invalid = jax.random.uniform(k3, (N_FG, T)) < 0.2
    bg_invalid = jax.random.uniform(k4, (N_BG, T)) < 0.2
    fg_trajectories = jnp.where(fg_invalid[..., None], jnp.nan, fg_xy)
    bg_trajectories = jnp.where(bg_invalid[..., None], jnp.nan, bg_xy)

    normalizer = RangeNormalizer((W, H, T))
    sampler = DinoTrackerSampler(
        batch_size, normalizer, (-1.0, 1.0),
        fg_trajectories=fg_trajectories, bg_trajectories=bg_trajectories,
        fg_traj_ratio=0.5, num_frames=num_frames, seed=0)

    sample = sampler.forward()
    jax.block_until_ready(sample)
    print("KERNEL_OK")
</pallas_src>

<mosaic_0001>
module attributes {stable_mosaic.version = 11 : i64} {
  func.func @kernel(%arg0: memref<16x3xf32, #tpu.memory_space<vmem>>, %arg1: memref<1x128xf32, #tpu.memory_space<vmem>>, %arg2: memref<24x128xf32, #tpu.memory_space<vmem>>) attributes {dimension_semantics = [], scalar_prefetch = 0 : i64, scratch_operands = 0 : i64, tpu.core_type = #tpu.core_type<tc>} {
    %c0 = arith.constant 0 : index
    %c0_0 = arith.constant 0 : index
    %0 = vector.load %arg0[%c0, %c0_0] : memref<16x3xf32, #tpu.memory_space<vmem>>, vector<16x3xf32>
    %c0_1 = arith.constant 0 : index
    %c0_2 = arith.constant 0 : index
    %1 = vector.load %arg1[%c0_1, %c0_2] : memref<1x128xf32, #tpu.memory_space<vmem>>, vector<1x128xf32>
    %2 = vector.extract_strided_slice %0 {offsets = [0, 0], sizes = [16, 1], strides = [1, 1]} : vector<16x3xf32> to vector<16x1xf32>
    %3 = vector.extract_strided_slice %0 {offsets = [0, 1], sizes = [16, 1], strides = [1, 1]} : vector<16x3xf32> to vector<16x1xf32>
    %4 = vector.extract_strided_slice %0 {offsets = [0, 2], sizes = [16, 1], strides = [1, 1]} : vector<16x3xf32> to vector<16x1xf32>
    %cst = arith.constant 0.0645161271 : f32
    %5 = vector.broadcast %cst : f32 to vector<16x1xf32>
    %6 = arith.mulf %2, %5 : vector<16x1xf32>
    %cst_3 = arith.constant -1.000000e+00 : f32
    %7 = vector.broadcast %cst_3 : f32 to vector<16x1xf32>
    %8 = arith.addf %6, %7 : vector<16x1xf32>
    %cst_4 = arith.constant 0.0869565233 : f32
    %9 = vector.broadcast %cst_4 : f32 to vector<16x1xf32>
    %10 = arith.mulf %3, %9 : vector<16x1xf32>
    %cst_5 = arith.constant -1.000000e+00 : f32
    %11 = vector.broadcast %cst_5 : f32 to vector<16x1xf32>
    %12 = arith.addf %10, %11 : vector<16x1xf32>
    %cst_6 = arith.constant 0.13333334 : f32
    %13 = vector.broadcast %cst_6 : f32 to vector<16x1xf32>
    %14 = arith.mulf %4, %13 : vector<16x1xf32>
    %cst_7 = arith.constant -1.000000e+00 : f32
    %15 = vector.broadcast %cst_7 : f32 to vector<16x1xf32>
    %16 = arith.addf %14, %15 : vector<16x1xf32>
    %17 = tpu.iota {dimensions = array<i32: 1>} : vector<16x128xi32>
    %18 = tpu.iota {dimensions = array<i32: 0>} : vector<16x128xi32>
    %19 = vector.broadcast %4 : vector<16x1xf32> to vector<16x128xf32>
    %20 = vector.broadcast %1 : vector<1x128xf32> to vector<16x128xf32>
    %21 = arith.cmpf oeq, %19, %20 : vector<16x128xf32>
    %22 = vector.broadcast %1 : vector<1x128xf32> to vector<16x128xf32>
    %23 = vector.broadcast %4 : vector<16x1xf32> to vector<16x128xf32>
    %24 = arith.cmpf olt, %22, %23 : vector<16x128xf32>
    %25 = arith.cmpi slt, %18, %17 : vector<16x128xi32>
    %26 = arith.andi %21, %25 : vector<16x128xi1>
    %c1_i32 = arith.constant 1 : i32
    %c0_i32 = arith.constant 0 : i32
    %27 = vector.broadcast %c1_i32 : i32 to vector<16x128xi32>
    %28 = vector.broadcast %c0_i32 : i32 to vector<16x128xi32>
    %29 = arith.select %26, %27, %28 : vector<16x128xi1>, vector<16x128xi32>
    %cst_8 = arith.constant dense<0> : vector<128xi32>
    %30 = vector.multi_reduction <add>, %29, %cst_8 [0] : vector<16x128xi32> to vector<128xi32>
    %31 = vector.shape_cast %30 : vector<128xi32> to vector<1x128xi32>
    %c0_i32_9 = arith.constant 0 : i32
    %32 = vector.broadcast %c0_i32_9 : i32 to vector<1x128xi32>
    %33 = arith.cmpi eq, %31, %32 : vector<1x128xi32>
    %34 = arith.cmpi slt, %17, %18 : vector<16x128xi32>
    %35 = arith.andi %21, %34 : vector<16x128xi1>
    %c1_i32_10 = arith.constant 1 : i32
    %c0_i32_11 = arith.constant 0 : i32
    %36 = vector.broadcast %c1_i32_10 : i32 to vector<16x128xi32>
    %37 = vector.broadcast %c0_i32_11 : i32 to vector<16x128xi32>
    %38 = arith.select %35, %36, %37 : vector<16x128xi1>, vector<16x128xi32>
    %cst_12 = arith.constant dense<0> : vector<16xi32>
    %39 = vector.multi_reduction <add>, %38, %cst_12 [1] : vector<16x128xi32> to vector<16xi32>
    %40 = vector.shape_cast %39 : vector<16xi32> to vector<16x1xi32>
    %c0_i32_13 = arith.constant 0 : i32
    %41 = vector.broadcast %c0_i32_13 : i32 to vector<16x1xi32>
    %42 = arith.cmpi eq, %40, %41 : vector<16x1xi32>
    %43 = vector.broadcast %33 : vector<1x128xi1> to vector<16x128xi1>
    %44 = arith.andi %43, %24 : vector<16x128xi1>
    %c1_i32_14 = arith.constant 1 : i32
    %c0_i32_15 = arith.constant 0 : i32
    %45 = vector.broadcast %c1_i32_14 : i32 to vector<16x128xi32>
    %46 = vector.broadcast %c0_i32_15 : i32 to vector<16x128xi32>
    %47 = arith.select %44, %45, %46 : vector<16x128xi1>, vector<16x128xi32>
    %cst_16 = arith.constant dense<0> : vector<16xi32>
    %48 = vector.multi_reduction <add>, %47, %cst_16 [1] : vector<16x128xi32> to vector<16xi32>
    %49 = vector.shape_cast %48 : vector<16xi32> to vector<16x1xi32>
    %50 = arith.sitofp %49 : vector<16x1xi32> to vector<16x1xf32>
    %51 = vector.broadcast %49 : vector<16x1xi32> to vector<16x128xi32>
    %52 = arith.cmpi eq, %51, %17 : vector<16x128xi32>
    %53 = vector.broadcast %42 : vector<16x1xi1> to vector<16x128xi1>
    %54 = arith.andi %53, %52 : vector<16x128xi1>
    %cst_17 = arith.constant 0.000000e+00 : f32
    %55 = vector.shape_cast %4 : vector<16x1xf32> to vector<16x1xf32>
    %56 = vector.broadcast %55 : vector<16x1xf32> to vector<16x128xf32>
    %57 = vector.broadcast %cst_17 : f32 to vector<16x128xf32>
    %58 = arith.select %54, %56, %57 : vector<16x128xi1>, vector<16x128xf32>
    %cst_18 = arith.constant dense<0.000000e+00> : vector<128xf32>
    %59 = vector.multi_reduction <add>, %58, %cst_18 [0] : vector<16x128xf32> to vector<128xf32>
    %60 = vector.shape_cast %59 : vector<128xf32> to vector<1x128xf32>
    %c1_i32_19 = arith.constant 1 : i32
    %c0_i32_20 = arith.constant 0 : i32
    %61 = vector.broadcast %c1_i32_19 : i32 to vector<16x128xi32>
    %62 = vector.broadcast %c0_i32_20 : i32 to vector<16x128xi32>
    %63 = arith.select %54, %61, %62 : vector<16x128xi1>, vector<16x128xi32>
    %cst_21 = arith.constant dense<0> : vector<128xi32>
    %64 = vector.multi_reduction <add>, %63, %cst_21 [0] : vector<16x128xi32> to vector<128xi32>
    %65 = vector.shape_cast %64 : vector<128xi32> to vector<1x128xi32>
    %c0_i32_22 = arith.constant 0 : i32
    %66 = vector.broadcast %c0_i32_22 : i32 to vector<1x128xi32>
    %67 = arith.cmpi sgt, %65, %66 : vector<1x128xi32>
    %cst_23 = arith.constant -1.000000e+00 : f32
    %68 = vector.broadcast %cst_23 : f32 to vector<1x128xf32>
    %69 = arith.select %67, %60, %68 : vector<1x128xi1>, vector<1x128xf32>
    %c0_i32_24 = arith.constant 0 : i32
    %70 = vector.broadcast %c0_i32_24 : i32 to vector<16x128xi32>
    %71 = arith.cmpi eq, %17, %70 : vector<16x128xi32>
    %cst_25 = arith.constant 0.000000e+00 : f32
    %72 = vector.shape_cast %8 : vector<16x1xf32> to vector<16x1xf32>
    %73 = vector.broadcast %72 : vector<16x1xf32> to vector<16x128xf32>
    %74 = vector.broadcast %cst_25 : f32 to vector<16x128xf32>
    %75 = arith.select %71, %73, %74 : vector<16x128xi1>, vector<16x128xf32>
    %c1_i32_26 = arith.constant 1 : i32
    %76 = vector.broadcast %c1_i32_26 : i32 to vector<16x128xi32>
    %77 = arith.cmpi eq, %17, %76 : vector<16x128xi32>
    %cst_27 = arith.constant 0.000000e+00 : f32
    %78 = vector.shape_cast %12 : vector<16x1xf32> to vector<16x1xf32>
    %79 = vector.broadcast %78 : vector<16x1xf32> to vector<16x128xf32>
    %80 = vector.broadcast %cst_27 : f32 to vector<16x128xf32>
    %81 = arith.select %77, %79, %80 : vector<16x128xi1>, vector<16x128xf32>
    %82 = arith.addf %75, %81 : vector<16x128xf32>
    %c2_i32 = arith.constant 2 : i32
    %83 = vector.broadcast %c2_i32 : i32 to vector<16x128xi32>
    %84 = arith.cmpi eq, %17, %83 : vector<16x128xi32>
    %c6_i32 = arith.constant 6 : i32
    %85 = vector.broadcast %c6_i32 : i32 to vector<16x128xi32>
    %86 = arith.cmpi eq, %17, %85 : vector<16x128xi32>
    %87 = arith.ori %84, %86 : vector<16x128xi1>
    %cst_28 = arith.constant 0.000000e+00 : f32
    %88 = vector.shape_cast %16 : vector<16x1xf32> to vector<16x1xf32>
    %89 = vector.broadcast %88 : vector<16x1xf32> to vector<16x128xf32>
    %90 = vector.broadcast %cst_28 : f32 to vector<16x128xf32>
    %91 = arith.select %87, %89, %90 : vector<16x128xi1>, vector<16x128xf32>
    %92 = arith.addf %82, %91 : vector<16x128xf32>
    %c3_i32 = arith.constant 3 : i32
    %93 = vector.broadcast %c3_i32 : i32 to vector<16x128xi32>
    %94 = arith.cmpi eq, %17, %93 : vector<16x128xi32>
    %cst_29 = arith.constant 0.000000e+00 : f32
    %95 = vector.shape_cast %50 : vector<16x1xf32> to vector<16x1xf32>
    %96 = vector.broadcast %95 : vector<16x1xf32> to vector<16x128xf32>
    %97 = vector.broadcast %cst_29 : f32 to vector<16x128xf32>
    %98 = arith.select %94, %96, %97 : vector<16x128xi1>, vector<16x128xf32>
    %99 = arith.addf %92, %98 : vector<16x128xf32>
    %c4_i32 = arith.constant 4 : i32
    %100 = vector.broadcast %c4_i32 : i32 to vector<16x128xi32>
    %101 = arith.cmpi eq, %17, %100 : vector<16x128xi32>
    %cst_30 = arith.constant 0.000000e+00 : f32
    %102 = vector.shape_cast %2 : vector<16x1xf32> to vector<16x1xf32>
    %103 = vector.broadcast %102 : vector<16x1xf32> to vector<16x128xf32>
    %104 = vector.broadcast %cst_30 : f32 to vector<16x128xf32>
    %105 = arith.select %101, %103, %104 : vector<16x128xi1>, vector<16x128xf32>
    %106 = arith.addf %99, %105 : vector<16x128xf32>
    %c5_i32 = arith.constant 5 : i32
    %107 = vector.broadcast %c5_i32 : i32 to vector<16x128xi32>
    %108 = arith.cmpi eq, %17, %107 : vector<16x128xi32>
    %cst_31 = arith.constant 0.000000e+00 : f32
    %109 = vector.shape_cast %3 : vector<16x1xf32> to vector<16x1xf32>
    %110 = vector.broadcast %109 : vector<16x1xf32> to vector<16x128xf32>
    %111 = vector.broadcast %cst_31 : f32 to vector<16x128xf32>
    %112 = arith.select %108, %110, %111 : vector<16x128xi1>, vector<16x128xf32>
    %113 = arith.addf %106, %112 : vector<16x128xf32>
    %c7_i32 = arith.constant 7 : i32
    %114 = vector.broadcast %c7_i32 : i32 to vector<16x128xi32>
    %115 = arith.cmpi eq, %17, %114 : vector<16x128xi32>
    %cst_32 = arith.constant 0.000000e+00 : f32
    %116 = vector.shape_cast %4 : vector<16x1xf32> to vector<16x1xf32>
    %117 = vector.broadcast %116 : vector<16x1xf32> to vector<16x128xf32>
    %118 = vector.broadcast %cst_32 : f32 to vector<16x128xf32>
    %119 = arith.select %115, %117, %118 : vector<16x128xi1>, vector<16x128xf32>
    %120 = arith.addf %113, %119 : vector<16x128xf32>
    %c0_33 = arith.constant 0 : index
    %c0_34 = arith.constant 0 : index
    %121 = vector.load %arg2[%c0_33, %c0_34] : memref<24x128xf32, #tpu.memory_space<vmem>>, vector<16x128xf32>
    tpu.vector_store %arg2[%c0_33, %c0_34], %120 {strides = array<i32>} : memref<24x128xf32, #tpu.memory_space<vmem>>, vector<16x128xf32>,
    %122 = tpu.iota {dimensions = array<i32: 0>} : vector<8x128xi32>
    %c0_i32_35 = arith.constant 0 : i32
    %123 = vector.broadcast %c0_i32_35 : i32 to vector<8x128xi32>
    %124 = arith.cmpi eq, %122, %123 : vector<8x128xi32>
    %cst_36 = arith.constant 0.000000e+00 : f32
    %125 = vector.shape_cast %69 : vector<1x128xf32> to vector<1x128xf32>
    %126 = vector.broadcast %125 : vector<1x128xf32> to vector<8x128xf32>
    %127 = vector.broadcast %cst_36 : f32 to vector<8x128xf32>
    %128 = arith.select %124, %126, %127 : vector<8x128xi1>, vector<8x128xf32>
    %c16 = arith.constant 16 : index
    %c0_37 = arith.constant 0 : index
    %129 = vector.load %arg2[%c16, %c0_37] : memref<24x128xf32, #tpu.memory_space<vmem>>, vector<8x128xf32>
    tpu.vector_store %arg2[%c16, %c0_37], %128 {strides = array<i32>} : memref<24x128xf32, #tpu.memory_space<vmem>>, vector<8x128xf32>,
    return
  }
}

</mosaic_0001>

<bundles_post_ra>
// kernel: fwd.1
= control target key start
LH: loop header
LB: loop body
LE: loop exit
PB: predicated region body
PF: predicated region fallthrough
CT: control target
= control target key end

     0   :  { %v259_v0 = vmov 2   ;;  %v260_v2 = vmov 0   ;;  %v261_v6 = vmov 1   ;;  %v26_v7 = vlaneseq  ;;  %s406_s0 = inlined_call_operand.vmem [shape: f32[16,3], index: 0, kind: input, shape index: {}]   ;;  %s407_s1 = inlined_call_operand.vmem [shape: f32[1,128], index: 1, kind: input, shape index: {}]   ;;  %s408_s2 = inlined_call_operand.vmem [shape: f32[24,128], index: 2, kind: output, shape index: {}]  }
   0x1   :  { %251 = vset.pattern.permute.xlu0 %v259_v0  ;;  %v281_v1 = vld [vmem:[%s406_s0] sm:$0xff]  ;;  %252 = vset.pattern.permute.xlu1 %v260_v2  ;;  %v289_v4 = vld [vmem:[%s406_s0 + $0x8] sm:$0xff] }
   0x2   :  { %33 = vperm.xlu0 %251, %v281_v1   ;;  %v14_v3 = vmul.f32 0.06451613, %v281_v1  ;;  %v294_v8 = vand.u32 127, %v26_v7  ;;  %v296_v9 = vshrl.u32 %v26_v7, 7  ;;  %v247_v10 = vld [vmem:[%s407_s1] ss:$0 sm:$0xff] }
   0x3   :  { %v18_v37 = vmul.f32 0.08695652, %v281_v1  ;;  %v19_v39 = vmul.f32 0.08695652, %v289_v4  ;;  %v22_v41 = vmul.f32 0.13333334, %v281_v1 }
   0x4   :  { %v16_v5 = vadd.f32 -1.0, %v14_v3  ;;  %v30_v11 = vadd.s32 8, %v296_v9  ;;  %vm65_vm0 = vcmp.lt.s32.totalorder %v294_v8, %v296_v9  ;;  %vm51_vm2 = vcmp.lt.s32.totalorder %v296_v9, %v294_v8 }
   0x5   :  { %v20_v38 = vadd.f32 -1.0, %v18_v37  ;;  %v21_v40 = vadd.f32 -1.0, %v19_v39  ;;  %v24_v42 = vadd.f32 -1.0, %v22_v41  ;;  %v23_v43 = vmul.f32 0.13333334, %v289_v4 }
   0x6   :  { %38 = vperm.xlu0 %251, %v289_v4   ;;  %160 = vperm.xlu1 %252, %v16_v5   ;;  %vm52_vm4 = vcmp.lt.s32.totalorder %v30_v11, %v294_v8  ;;  %vm66_vm6 = vcmp.lt.s32.totalorder %v294_v8, %v30_v11  ;;  %v15_v44 = vmul.f32 0.06451613, %v289_v4  ;;  %vm185_vm15 = vcmp.eq.s32.totalorder %v294_v8, 2 }
   0x7   :  { %v25_v45 = vadd.f32 -1.0, %v23_v43 }
   0x8   :  { %v17_v46 = vadd.f32 -1.0, %v15_v44 }
   0xa   :  { %253 = vset.pattern.permute.xlu0 %v260_v2  ;;  %254 = vset.pattern.permute.xlu1 %v261_v6 }
  0x7d   :  { %v302_v12 = vpop.permute.xlu0 %33 }
  0x7e   :  { %vm47_vm1 = vcmp.eq.f32.partialorder %v302_v12, %v247_v10  ;;  %vm49_vm10 = vcmp.lt.f32.partialorder %v247_v10, %v302_v12 }
  0x7f   :  { %vm67_vm3 = vmand %vm47_vm1, %vm65_vm0  ;;  %vm186_vm0 = vcmp.eq.s32.totalorder %v294_v8, 6 }
  0x80   :  { %vm53_vm5 = vmand %vm47_vm1, %vm51_vm2  ;;  %v69_v14 = vsel %vm67_vm3, 1, %v260_v2  ;;  %vm170_vm1 = vcmp.eq.s32.totalorder %v294_v8, 1  ;;  %vm157_vm2 = vcmp.eq.s32.totalorder %v294_v8, 0 }
  0x81   :  { %v310_v13 = vpop.permute.xlu0 %38  ;;  %v72_v15 = vshrl.u32 %v69_v14, 16  ;;  %v55_v16 = vsel %vm53_vm5, 1, %v260_v2  ;;  %v71_v24 = vand.u32 65535, %v69_v14  ;;  %v161_v54 = vpop.permute.xlu1 %160  ;;  %vm347_vm3 = vmor %vm185_vm15, %vm186_vm0 }
  0x82   :  { %vm48_vm7 = vcmp.eq.f32.partialorder %v310_v13, %v247_v10  ;;  %vm50_vm13 = vcmp.lt.f32.partialorder %v247_v10, %v310_v13 }
  0x83   :  { %vm54_vm8 = vmand %vm48_vm7, %vm52_vm4  ;;  %v74_v17 = vcvt.s32.f32 %v72_v15  ;;  %v73_v27 = vcvt.s32.f32 %v71_v24  ;;  %v168_v24 = vsel %vm157_vm2, %v161_v54, 0.0  ;;  %vm202_vm4 = vcmp.eq.s32.totalorder %v294_v8, 3 }
  0x84   :  { %v56_v18 = vsel %vm54_vm8, 1, %v260_v2  ;;  %vm68_vm9 = vmand %vm48_vm7, %vm66_vm6  ;;  %vm207_vm7 = vcmp.eq.s32.totalorder %v294_v8, 4  ;;  %vm220_vm8 = vcmp.eq.s32.totalorder %v294_v8, 5 }
  0x85   :  { %v57_v19 = vadd.s32 %v56_v18, %v55_v16  ;;  %v70_v20 = vsel %vm68_vm9, 1, %v260_v2  ;;  %77 = vadd.xlane.f32.xlu1 %v74_v17 }
  0x86   :  { %v84_v21 = vshrl.u32 %v70_v20, 16  ;;  %v83_v28 = vand.u32 65535, %v70_v20 }
  0x87   :  { %v58_v22 = vrot.slane %v57_v19, 4 }
  0x88   :  { %v86_v23 = vcvt.s32.f32 %v84_v21  ;;  %v85_v31 = vcvt.s32.f32 %v83_v28 }
  0x89   :  { %v59_v25 = vadd.s32 %v58_v22, %v57_v19 }
  0x8a   :  { %89 = vadd.xlane.f32.xlu1 %v86_v23 }
  0x8b   :  { %v60_v26 = vrot.slane %v59_v25, 2 }
  0x8d   :  { %v61_v29 = vadd.s32 %v60_v26, %v59_v25 }
  0x8e   :  { %75 = vadd.xlane.f32.xlu1 %v73_v27 }
  0x8f   :  { %v62_v30 = vrot.slane %v61_v29, 1 }
  0x91   :  { %v63_v32 = vadd.s32 %v62_v30, %v61_v29 }
  0x92   :  { %87 = vadd.xlane.f32.xlu1 %v85_v31 }
  0x93   :  { %vm64_vm11 = vcmp.eq.s32.totalorder %v63_v32, 0 }
  0x94   :  { %vm99_vm12 = vmand %vm64_vm11, %vm49_vm10 }
  0x95   :  { %v101_v33 = vsel %vm99_vm12, 1, %v260_v2  ;;  %vm321_vm14 = vmand %vm64_vm11, %vm50_vm13  ;;  %vm233_vm11 = vcmp.eq.s32.totalorder %v294_v8, 7 }
  0x96   :  { %v104_v35 = vshrl.u32 %v101_v33, 16  ;;  %v102_v47 = vsel %vm321_vm14, 1, %v260_v2  ;;  %v103_v50 = vand.u32 65535, %v101_v33  ;;  %vm240_vm14 = vcmp.eq.s32.totalorder %v296_v9, 0 }
  0x97   :  { %v116_v48 = vshrl.u32 %v102_v47, 16  ;;  %v115_v52 = vand.u32 65535, %v102_v47 }
  0x98   :  { %v106_v36 = vcvt.s32.f32 %v104_v35  ;;  %v105_v51 = vcvt.s32.f32 %v103_v50 }
  0x99   :  { %v118_v49 = vcvt.s32.f32 %v116_v48  ;;  %v117_v53 = vcvt.s32.f32 %v115_v52 }
  0x9a   :  { %109 = vadd.xlane.f32.xlu0 %v106_v36 }
  0xa3   :  { %173 = vperm.xlu1 %254, %v20_v38  }
  0xa7   :  { %178 = vperm.xlu1 %254, %v21_v40  }
  0xab   :  { %255 = vset.pattern.permute.xlu1 %v259_v0 }
  0xac   :  { %190 = vperm.xlu1 %255, %v24_v42  }
  0xb0   :  { %195 = vperm.xlu1 %255, %v25_v45   ;;  %165 = vperm.xlu0 %253, %v17_v46  }
  0xb4   :  { %256 = vset.pattern.permute.xlu1 %v260_v2  ;;  %258 = vset.pattern.permute.xlu0 %v261_v6 }
  0xb5   :  { %209 = vperm.xlu1 %256, %v281_v1  }
  0xb9   :  { %213 = vperm.xlu1 %256, %v289_v4  }
  0xbd   :  { %257 = vset.pattern.permute.xlu1 %v261_v6 }
  0xbe   :  { %222 = vperm.xlu1 %257, %v281_v1  }
  0xe2   :  { %121 = vadd.xlane.f32.xlu1 %v118_v49 }
  0xe6   :  { %107 = vadd.xlane.f32.xlu1 %v105_v51 }
  0xea   :  { %119 = vadd.xlane.f32.xlu1 %v117_v53 }
  0xfb   :  { %226 = vperm.xlu1 %257, %v289_v4  }
 0x10e   :  { %v78_v55 = vpop.xlane.xlu1 %77 }
 0x10f   :  { %v80_v5 = vcvt.f32.s32 %v78_v55 }
 0x111   :  { %v81_v11 = vshll.u32 %v80_v5, 16 }
 0x113   :  { %v90_v56 = vpop.xlane.xlu1 %89 }
 0x114   :  { %v92_v4 = vcvt.f32.s32 %v90_v56 }
 0x116   :  { %v93_v22 = vshll.u32 %v92_v4, 16 }
 0x117   :  { %v76_v57 = vpop.xlane.xlu1 %75 }
 0x118   :  { %v79_v10 = vcvt.f32.s32 %v76_v57 }
 0x11a   :  { %v82_v23 = vadd.s32 %v81_v11, %v79_v10 }
 0x11b   :  { %v88_v58 = vpop.xlane.xlu1 %87 }
 0x11c   :  { %v91_v14 = vcvt.f32.s32 %v88_v58  ;;  %vm95_vm6 = vcmp.eq.s32.totalorder %v82_v23, 0  ;;  %v234_v58 = vsel %vm233_vm11, %v302_v12, 0.0 }
 0x11e   :  { %v94_v28 = vadd.s32 %v93_v22, %v91_v14 }
 0x11f   :  { %v174_v59 = vpop.permute.xlu1 %173 }
 0x120   :  { %v181_v18 = vsel %vm170_vm1, %v174_v59, 0.0  ;;  %vm96_vm10 = vcmp.eq.s32.totalorder %v94_v28, 0 }
 0x121   :  { %v183_v29 = vadd.f32 %v181_v18, %v168_v24 }
 0x123   :  { %v179_v60 = vpop.permute.xlu1 %178  ;;  %v110_v3 = vpop.xlane.xlu0 %109 }
 0x124   :  { %v112_v7 = vcvt.f32.s32 %v110_v3  ;;  %v182_v30 = vsel %vm170_vm1, %v179_v60, 0.0 }
 0x126   :  { %v113_v19 = vshll.u32 %v112_v7, 16 }
 0x127   :  { %v191_v61 = vpop.permute.xlu1 %190 }
 0x128   :  { %v198_v25 = vsel %vm347_vm3, %v191_v61, 0.0 }
 0x129   :  { %v200_v35 = vadd.f32 %v198_v25, %v183_v29 }
 0x12b   :  { %v196_v62 = vpop.permute.xlu1 %195  ;;  %v166_v16 = vpop.permute.xlu0 %165 }
 0x12c   :  { %v169_v26 = vsel %vm157_vm2, %v166_v16, 0.0  ;;  %v199_v41 = vsel %vm347_vm3, %v196_v62, 0.0 }
 0x12d   :  { %v184_v36 = vadd.f32 %v182_v30, %v169_v26 }
 0x12f   :  { %v201_v44 = vadd.f32 %v199_v41, %v184_v36 }
 0x130   :  { %v210_v63 = vpop.permute.xlu1 %209 }
 0x131   :  { %v216_v42 = vsel %vm207_vm7, %v210_v63, 0.0 }
 0x134   :  { %v341_v0 = vpop.permute.xlu1 %213 }
 0x135   :  { %v217_v57 = vsel %vm207_vm7, %v341_v0, 0.0  ;;  %v235_v0 = vsel %vm233_vm11, %v310_v13, 0.0 }
 0x139   :  { %v223_v1 = vpop.permute.xlu1 %222 }
 0x13a   :  { %v229_v45 = vsel %vm220_vm8, %v223_v1, 0.0 }
 0x16b   :  { %v122_v6 = vpop.xlane.xlu1 %121 }
 0x16c   :  { %v124_v20 = vcvt.f32.s32 %v122_v6 }
 0x16e   :  { %v125_v32 = vshll.u32 %v124_v20, 16 }
 0x16f   :  { %v108_v17 = vpop.xlane.xlu1 %107 }
 0x170   :  { %v111_v21 = vcvt.f32.s32 %v108_v17 }
 0x172   :  { %v114_v27 = vadd.s32 %v113_v19, %v111_v21 }
 0x173   :  { %v120_v31 = vpop.xlane.xlu1 %119 }
 0x174   :  { %v127_v33 = vcvt.s32.f32 %v114_v27  ;;  %vm129_vm5 = vcmp.eq.s32.totalorder %v114_v27, %v294_v8  ;;  %v123_v34 = vcvt.f32.s32 %v120_v31 }
 0x175   :  { %vm361_vm9 = vmand %vm95_vm6, %vm129_vm5 }
 0x176   :  { %v203_v38 = vsel %vm202_vm4, %v127_v33, 0.0  ;;  %v126_v39 = vadd.s32 %v125_v32, %v123_v34  ;;  %v137_v46 = vsel %vm361_vm9, %v302_v12, 0.0  ;;  %v146_v48 = vsel %vm361_vm9, 1, %v260_v2 }
 0x177   :  { %v205_v40 = vadd.f32 %v203_v38, %v200_v35  ;;  %v227_v56 = vpop.permute.xlu1 %226 }
 0x178   :  { %v128_v43 = vcvt.s32.f32 %v126_v39  ;;  %vm130_vm12 = vcmp.eq.s32.totalorder %v126_v39, %v294_v8  ;;  %v230_v62 = vsel %vm220_vm8, %v227_v56, 0.0 }
 0x179   :  { %v218_v47 = vadd.f32 %v216_v42, %v205_v40  ;;  %vm136_vm13 = vmand %vm96_vm10, %vm130_vm12 }
 0x17a   :  { %v138_v49 = vsel %vm136_vm13, %v310_v13, 0.0  ;;  %v147_v50 = vsel %vm136_vm13, 1, %v260_v2  ;;  %v204_v51 = vsel %vm202_vm4, %v128_v43, 0.0 }
 0x17b   :  { %v139_v52 = vadd.f32 %v138_v49, %v137_v46  ;;  %v148_v53 = vadd.s32 %v147_v50, %v146_v48  ;;  %v206_v54 = vadd.f32 %v204_v51, %v201_v44  ;;  %v231_v55 = vadd.f32 %v229_v45, %v218_v47 }
 0x17d   :  { %v140_v59 = vrot.slane %v139_v52, 4  ;;  %v149_v60 = vrot.slane %v148_v53, 4  ;;  %v219_v61 = vadd.f32 %v217_v57, %v206_v54  ;;  %v236_v2 = vadd.f32 %v234_v58, %v231_v55 }
 0x17f   :  { %v141_v63 = vadd.f32 %v140_v59, %v139_v52  ;;  %v150_v1 = vadd.s32 %v149_v60, %v148_v53  ;;  %238 = vst [vmem:[%s408_s2] sm:$0xff] %v236_v2  ;;  %v232_v3 = vadd.f32 %v230_v62, %v219_v61 }
 0x181   :  { %v142_v5 = vrot.slane %v141_v63, 2  ;;  %v151_v12 = vrot.slane %v150_v1, 2  ;;  %v237_v6 = vadd.f32 %v235_v0, %v232_v3 }
 0x183   :  { %v143_v7 = vadd.f32 %v142_v5, %v141_v63  ;;  %v152_v4 = vadd.s32 %v151_v12, %v150_v1  ;;  %239 = vst [vmem:[%s408_s2 + $0x8] sm:$0xff] %v237_v6 }
 0x185   :  { %v144_v10 = vrot.slane %v143_v7, 1  ;;  %v153_v11 = vrot.slane %v152_v4, 1 }
 0x187   :  { %v145_v14 = vadd.f32 %v144_v10, %v143_v7  ;;  %v154_v15 = vadd.s32 %v153_v11, %v152_v4 }
 0x189   :  { %vm155_vm15 = vcmp.gt.s32.totalorder %v154_v15, 0 }
 0x18a   :  { %v156_v16 = vsel %vm155_vm15, %v145_v14, -1.0 }
 0x18b   :  { %v241_v17 = vsel %vm240_vm14, %v156_v16, 0.0 }
 0x18c   :  { %242 = vst [vmem:[%s408_s2 + $0x10] sm:$0xff] %v241_v17 }

</bundles_post_ra>
